<compile_context>
chip_gen: v7x
topology: tpu7x:2x2x1
jax: 0.10.0
libtpu: 0.0.40
codegen_flags: <defaults>
</compile_context>

<pallas_src>
import jax
import jax.numpy as jnp
from jax.experimental import pallas as pl
from jax.experimental.pallas import tpu as pltpu


# Feature widths through the net: input, then output of each of the 6 Linear layers.
_LAYER_DIMS = [200, 500, 100, 20, 20, 20, 20]
_BN_EPS = 1e-5


def _round_up(n, m):
    return (n + m - 1) // m * m


# ---------------------------------------------------------------------------
# Kernel: fused  bn0 -> relu -> 5x(Linear[+folded BN] -> relu) -> Linear
# ---------------------------------------------------------------------------
def _embedding_mlp_kernel(x_ref, bn_s_ref, bn_t_ref, *rest):
    o_ref = rest[-1]
    wb = rest[:-1]                       # (w0, b0, w1, b1, ..., w5, b5)
    n_layers = len(wb) // 2

    # bn0 (eval mode, per-feature scale/shift) + relu0 — padded lanes stay 0.
    h = x_ref[...] * bn_s_ref[...] + bn_t_ref[...]
    h = jnp.maximum(h, 0.0)

    for k in range(n_layers):            # unrolled at trace time (6 layers)
        w_ref, b_ref = wb[2 * k], wb[2 * k + 1]
        y = jnp.dot(h.astype(jnp.bfloat16), w_ref[...],
                    preferred_element_type=jnp.float32) + b_ref[...]
        h = jnp.maximum(y, 0.0) if k < n_layers - 1 else y   # no ReLU after fc5

    o_ref[...] = h.astype(o_ref.dtype)


# ---------------------------------------------------------------------------
# Parameter preparation: BN folding + lane padding + bf16 weights
# ---------------------------------------------------------------------------
def prepare_params(torch_params, eps=_BN_EPS):
    """torch_params: {"fc": [(W(out,in), b)], "bn": [(gamma, beta, mean, var)]} (f32)."""
    fcs, bns = torch_params["fc"], torch_params["bn"]

    scales, shifts = [], []
    for gamma, beta, mean, var in bns:   # eval-mode BN -> per-feature scale/shift
        s = gamma / jnp.sqrt(var + eps)
        scales.append(s)
        shifts.append(beta - mean * s)

    # Fold bn_{k+1} into fc_k (fc_k is immediately followed by bn_{k+1} for k < 5).
    folded = []
    for k, (w, b) in enumerate(fcs):
        wt, bb = w.T, b                  # store W as (in, out)
        if k + 1 < len(bns):
            s, t = scales[k + 1], shifts[k + 1]
            wt = wt * s[None, :]
            bb = bb * s + t
        folded.append((wt, bb))

    dpad = [_round_up(d, 128) for d in _LAYER_DIMS]   # [256,512,128,128,128,128,128]

    bn0_s = jnp.pad(scales[0], (0, dpad[0] - scales[0].shape[0])).reshape(1, -1)
    bn0_t = jnp.pad(shifts[0], (0, dpad[0] - shifts[0].shape[0])).reshape(1, -1)

    wbs = []
    for k, (wt, bb) in enumerate(folded):
        wp = jnp.pad(wt, ((0, dpad[k] - wt.shape[0]), (0, dpad[k + 1] - wt.shape[1])))
        bp = jnp.pad(bb, (0, dpad[k + 1] - bb.shape[0])).reshape(1, -1)
        wbs += [wp.astype(jnp.bfloat16), bp.astype(jnp.float32)]

    return bn0_s.astype(jnp.float32), bn0_t.astype(jnp.float32), tuple(wbs)


# ---------------------------------------------------------------------------
# Wrapper
# ---------------------------------------------------------------------------
def embedding_net_forward(x, prepared):
    """x: (B, 200) f32 -> (B, 20) f32 embedding."""
    bn0_s, bn0_t, wbs = prepared
    B, D = x.shape
    D0P = bn0_s.shape[1]                 # 256
    EP = wbs[-1].shape[1]                # 128 (padded embedding width)
    E = _LAYER_DIMS[-1]                  # 20

    TB = 256 if B >= 256 else _round_up(B, 8)   # batch tile (sublane-aligned)
    B_pad = _round_up(B, TB)
    xp = jnp.pad(x, ((0, B_pad - B), (0, D0P - D)))
    n_tiles = B_pad // TB

    in_specs = [
        pl.BlockSpec((TB, D0P), lambda i: (i, 0)),   # x batch tile
        pl.BlockSpec((1, D0P), lambda i: (0, 0)),    # bn0 scale
        pl.BlockSpec((1, D0P), lambda i: (0, 0)),    # bn0 shift
    ]
    for a in wbs:                                    # shared weights / biases (constant)
        in_specs.append(pl.BlockSpec(a.shape, lambda i: (0, 0)))

    out = pl.pallas_call(
        _embedding_mlp_kernel,
        out_shape=jax.ShapeDtypeStruct((B_pad, EP), x.dtype),
        grid_spec=pltpu.PrefetchScalarGridSpec(
            num_scalar_prefetch=0,
            grid=(n_tiles,),
            in_specs=in_specs,
            out_specs=pl.BlockSpec((TB, EP), lambda i: (i, 0)),
        ),
        compiler_params=pltpu.CompilerParams(
            dimension_semantics=("parallel",)),      # independent batch tiles (v7x 2 TCs)
    )(xp, bn0_s, bn0_t, *wbs)

    return out[:B, :E]


# ---------------------------------------------------------------------------
# References
# ---------------------------------------------------------------------------
def _reference_prepared(x, prepared):
    """Replays the kernel's exact (folded, padded, bf16-matmul) math in plain JAX."""
    bn0_s, bn0_t, wbs = prepared
    B, D = x.shape
    h = jnp.pad(x, ((0, 0), (0, bn0_s.shape[1] - D)))
    h = jnp.maximum(h * bn0_s + bn0_t, 0.0)
    n = len(wbs) // 2
    for k in range(n):
        w, b = wbs[2 * k], wbs[2 * k + 1]
        y = jnp.dot(h.astype(jnp.bfloat16), w, preferred_element_type=jnp.float32) + b
        h = jnp.maximum(y, 0.0) if k < n - 1 else y
    return h[:, :_LAYER_DIMS[-1]]


def _reference_torch(x, torch_params, eps=_BN_EPS):
    """Exact PyTorch layer sequence (eval-mode BN), matmul operands mirrored to bf16."""
    h = x
    n = len(torch_params["fc"])
    for k in range(n):
        w, b = torch_params["fc"][k]
        gamma, beta, mean, var = torch_params["bn"][k]
        h = (h - mean) / jnp.sqrt(var + eps) * gamma + beta        # BatchNorm1d (eval)
        h = jnp.maximum(h, 0.0)                                    # ReLU
        h = jnp.dot(h.astype(jnp.bfloat16), w.T.astype(jnp.bfloat16),
                    preferred_element_type=jnp.float32) + b        # Linear
    return h


# ---------------------------------------------------------------------------
# Deterministic synthetic parameters (PyTorch layout: W is (out, in))
# ---------------------------------------------------------------------------
def init_torch_style_params(key, dtype=jnp.float32):
    dims = _LAYER_DIMS
    n = len(dims) - 1
    keys = jax.random.split(key, 6 * n)
    ki = iter(keys)
    fc, bn = [], []
    for k in range(n):
        din, dout = dims[k], dims[k + 1]
        w = jax.random.normal(next(ki), (dout, din), dtype) / jnp.sqrt(din)
        b = 0.1 * jax.random.normal(next(ki), (dout,), dtype)
        gamma = 1.0 + 0.1 * jax.random.normal(next(ki), (din,), dtype)
        beta = 0.1 * jax.random.normal(next(ki), (din,), dtype)
        mean = 0.1 * jax.random.normal(next(ki), (din,), dtype)
        var = 1.0 + 0.25 * jax.random.uniform(next(ki), (din,), dtype)
        fc.append((w, b))
        bn.append((gamma, beta, mean, var))
    return {"fc": fc, "bn": bn}


if __name__ == "__main__":
    B = 16
    key = jax.random.PRNGKey(0)
    kx, kp = jax.random.split(key)
    x = jax.random.normal(kx, (B, _LAYER_DIMS[0]), jnp.float32)

    torch_params = init_torch_style_params(kp)
    prepared = prepare_params(torch_params)

    out = embedding_net_forward(x, prepared)
    jax.block_until_ready(out)
    assert out.shape == (B, _LAYER_DIMS[-1])

    # Tight check: kernel wiring vs identical math in plain JAX.
    ref_m = _reference_prepared(x, prepared)
    assert jnp.allclose(out, ref_m, atol=2e-3, rtol=2e-3)

    # Semantic check: original (unfolded, unpadded) PyTorch op sequence.
    ref_t = _reference_torch(x, torch_params)
    assert jnp.allclose(out, ref_t, atol=5e-2, rtol=5e-2)

    print("KERNEL_OK")
</pallas_src>

<mosaic_0001>
module attributes {stable_mosaic.version = 11 : i64} {
  func.func @_embedding_mlp_kernel(%arg0: i32, %arg1: memref<16x256xf32, #tpu.memory_space<vmem>>, %arg2: memref<1x256xf32, #tpu.memory_space<vmem>>, %arg3: memref<1x256xf32, #tpu.memory_space<vmem>>, %arg4: memref<256x512xbf16, #tpu.memory_space<vmem>>, %arg5: memref<1x512xf32, #tpu.memory_space<vmem>>, %arg6: memref<512x128xbf16, #tpu.memory_space<vmem>>, %arg7: memref<1x128xf32, #tpu.memory_space<vmem>>, %arg8: memref<128x128xbf16, #tpu.memory_space<vmem>>, %arg9: memref<1x128xf32, #tpu.memory_space<vmem>>, %arg10: memref<128x128xbf16, #tpu.memory_space<vmem>>, %arg11: memref<1x128xf32, #tpu.memory_space<vmem>>, %arg12: memref<128x128xbf16, #tpu.memory_space<vmem>>, %arg13: memref<1x128xf32, #tpu.memory_space<vmem>>, %arg14: memref<128x128xbf16, #tpu.memory_space<vmem>>, %arg15: memref<1x128xf32, #tpu.memory_space<vmem>>, %arg16: memref<16x128xf32, #tpu.memory_space<vmem>>) attributes {dimension_semantics = [#tpu.dimension_semantics<parallel>], iteration_bounds = array<i64: 1>, scalar_prefetch = 0 : i64, scratch_operands = 0 : i64, tpu.core_type = #tpu.core_type<tc>, window_params = [{transform_indices = @transform_0, window_bounds = array<i64: 16, 256>}, {pipeline_mode = #tpu.pipeline_mode<synchronous>, transform_indices = @transform_1, window_bounds = array<i64: 1, 256>}, {pipeline_mode = #tpu.pipeline_mode<synchronous>, transform_indices = @transform_2, window_bounds = array<i64: 1, 256>}, {pipeline_mode = #tpu.pipeline_mode<synchronous>, transform_indices = @transform_3, window_bounds = array<i64: 256, 512>}, {pipeline_mode = #tpu.pipeline_mode<synchronous>, transform_indices = @transform_4, window_bounds = array<i64: 1, 512>}, {pipeline_mode = #tpu.pipeline_mode<synchronous>, transform_indices = @transform_5, window_bounds = array<i64: 512, 128>}, {pipeline_mode = #tpu.pipeline_mode<synchronous>, transform_indices = @transform_6, window_bounds = array<i64: 1, 128>}, {pipeline_mode = #tpu.pipeline_mode<synchronous>, transform_indices = @transform_7, window_bounds = array<i64: 128, 128>}, {pipeline_mode = #tpu.pipeline_mode<synchronous>, transform_indices = @transform_8, window_bounds = array<i64: 1, 128>}, {pipeline_mode = #tpu.pipeline_mode<synchronous>, transform_indices = @transform_9, window_bounds = array<i64: 128, 128>}, {pipeline_mode = #tpu.pipeline_mode<synchronous>, transform_indices = @transform_10, window_bounds = array<i64: 1, 128>}, {pipeline_mode = #tpu.pipeline_mode<synchronous>, transform_indices = @transform_11, window_bounds = array<i64: 128, 128>}, {pipeline_mode = #tpu.pipeline_mode<synchronous>, transform_indices = @transform_12, window_bounds = array<i64: 1, 128>}, {pipeline_mode = #tpu.pipeline_mode<synchronous>, transform_indices = @transform_13, window_bounds = array<i64: 128, 128>}, {pipeline_mode = #tpu.pipeline_mode<synchronous>, transform_indices = @transform_14, window_bounds = array<i64: 1, 128>}, {transform_indices = @transform_15, window_bounds = array<i64: 16, 128>}]} {
    %c0 = arith.constant 0 : index
    %c0_0 = arith.constant 0 : index
    %0 = vector.load %arg1[%c0, %c0_0] : memref<16x256xf32, #tpu.memory_space<vmem>>, vector<16x256xf32>
    %c0_1 = arith.constant 0 : index
    %c0_2 = arith.constant 0 : index
    %1 = vector.load %arg2[%c0_1, %c0_2] : memref<1x256xf32, #tpu.memory_space<vmem>>, vector<1x256xf32>
    %2 = vector.broadcast %1 : vector<1x256xf32> to vector<16x256xf32>
    %3 = arith.mulf %0, %2 : vector<16x256xf32>
    %c0_3 = arith.constant 0 : index
    %c0_4 = arith.constant 0 : index
    %4 = vector.load %arg3[%c0_3, %c0_4] : memref<1x256xf32, #tpu.memory_space<vmem>>, vector<1x256xf32>
    %5 = vector.broadcast %4 : vector<1x256xf32> to vector<16x256xf32>
    %6 = arith.addf %3, %5 : vector<16x256xf32>
    %cst = arith.constant 0.000000e+00 : f32
    %7 = vector.broadcast %cst : f32 to vector<16x256xf32>
    %8 = arith.maximumf %6, %7 : vector<16x256xf32>
    %9 = arith.truncf %8 : vector<16x256xf32> to vector<16x256xbf16>
    %c0_5 = arith.constant 0 : index
    %c0_6 = arith.constant 0 : index
    %10 = vector.load %arg4[%c0_5, %c0_6] : memref<256x512xbf16, #tpu.memory_space<vmem>>, vector<256x512xbf16>
    %cst_7 = arith.constant dense<0.000000e+00> : vector<16x512xf32>
    %11 = tpu.matmul %9, %10, %cst_7 {dimension_numbers = #tpu.dot_dimension_numbers<[1], [0], [0], [1], [0, 0, 1, 1], [], []>} : vector<16x256xbf16>, vector<256x512xbf16>, vector<16x512xf32> -> vector<16x512xf32>
    %c0_8 = arith.constant 0 : index
    %c0_9 = arith.constant 0 : index
    %12 = vector.load %arg5[%c0_8, %c0_9] : memref<1x512xf32, #tpu.memory_space<vmem>>, vector<1x512xf32>
    %13 = vector.broadcast %12 : vector<1x512xf32> to vector<16x512xf32>
    %14 = arith.addf %11, %13 : vector<16x512xf32>
    %cst_10 = arith.constant 0.000000e+00 : f32
    %15 = vector.broadcast %cst_10 : f32 to vector<16x512xf32>
    %16 = arith.maximumf %14, %15 : vector<16x512xf32>
    %17 = arith.truncf %16 : vector<16x512xf32> to vector<16x512xbf16>
    %c0_11 = arith.constant 0 : index
    %c0_12 = arith.constant 0 : index
    %18 = vector.load %arg6[%c0_11, %c0_12] : memref<512x128xbf16, #tpu.memory_space<vmem>>, vector<512x128xbf16>
    %cst_13 = arith.constant dense<0.000000e+00> : vector<16x128xf32>
    %19 = tpu.matmul %17, %18, %cst_13 {dimension_numbers = #tpu.dot_dimension_numbers<[1], [0], [0], [1], [0, 0, 1, 1], [], []>} : vector<16x512xbf16>, vector<512x128xbf16>, vector<16x128xf32> -> vector<16x128xf32>
    %c0_14 = arith.constant 0 : index
    %c0_15 = arith.constant 0 : index
    %20 = vector.load %arg7[%c0_14, %c0_15] : memref<1x128xf32, #tpu.memory_space<vmem>>, vector<1x128xf32>
    %21 = vector.broadcast %20 : vector<1x128xf32> to vector<16x128xf32>
    %22 = arith.addf %19, %21 : vector<16x128xf32>
    %cst_16 = arith.constant 0.000000e+00 : f32
    %23 = vector.broadcast %cst_16 : f32 to vector<16x128xf32>
    %24 = arith.maximumf %22, %23 : vector<16x128xf32>
    %25 = arith.truncf %24 : vector<16x128xf32> to vector<16x128xbf16>
    %c0_17 = arith.constant 0 : index
    %c0_18 = arith.constant 0 : index
    %26 = vector.load %arg8[%c0_17, %c0_18] : memref<128x128xbf16, #tpu.memory_space<vmem>>, vector<128x128xbf16>
    %cst_19 = arith.constant dense<0.000000e+00> : vector<16x128xf32>
    %27 = tpu.matmul %25, %26, %cst_19 {dimension_numbers = #tpu.dot_dimension_numbers<[1], [0], [0], [1], [0, 0, 1, 1], [], []>} : vector<16x128xbf16>, vector<128x128xbf16>, vector<16x128xf32> -> vector<16x128xf32>
    %c0_20 = arith.constant 0 : index
    %c0_21 = arith.constant 0 : index
    %28 = vector.load %arg9[%c0_20, %c0_21] : memref<1x128xf32, #tpu.memory_space<vmem>>, vector<1x128xf32>
    %29 = vector.broadcast %28 : vector<1x128xf32> to vector<16x128xf32>
    %30 = arith.addf %27, %29 : vector<16x128xf32>
    %cst_22 = arith.constant 0.000000e+00 : f32
    %31 = vector.broadcast %cst_22 : f32 to vector<16x128xf32>
    %32 = arith.maximumf %30, %31 : vector<16x128xf32>
    %33 = arith.truncf %32 : vector<16x128xf32> to vector<16x128xbf16>
    %c0_23 = arith.constant 0 : index
    %c0_24 = arith.constant 0 : index
    %34 = vector.load %arg10[%c0_23, %c0_24] : memref<128x128xbf16, #tpu.memory_space<vmem>>, vector<128x128xbf16>
    %cst_25 = arith.constant dense<0.000000e+00> : vector<16x128xf32>
    %35 = tpu.matmul %33, %34, %cst_25 {dimension_numbers = #tpu.dot_dimension_numbers<[1], [0], [0], [1], [0, 0, 1, 1], [], []>} : vector<16x128xbf16>, vector<128x128xbf16>, vector<16x128xf32> -> vector<16x128xf32>
    %c0_26 = arith.constant 0 : index
    %c0_27 = arith.constant 0 : index
    %36 = vector.load %arg11[%c0_26, %c0_27] : memref<1x128xf32, #tpu.memory_space<vmem>>, vector<1x128xf32>
    %37 = vector.broadcast %36 : vector<1x128xf32> to vector<16x128xf32>
    %38 = arith.addf %35, %37 : vector<16x128xf32>
    %cst_28 = arith.constant 0.000000e+00 : f32
    %39 = vector.broadcast %cst_28 : f32 to vector<16x128xf32>
    %40 = arith.maximumf %38, %39 : vector<16x128xf32>
    %41 = arith.truncf %40 : vector<16x128xf32> to vector<16x128xbf16>
    %c0_29 = arith.constant 0 : index
    %c0_30 = arith.constant 0 : index
    %42 = vector.load %arg12[%c0_29, %c0_30] : memref<128x128xbf16, #tpu.memory_space<vmem>>, vector<128x128xbf16>
    %cst_31 = arith.constant dense<0.000000e+00> : vector<16x128xf32>
    %43 = tpu.matmul %41, %42, %cst_31 {dimension_numbers = #tpu.dot_dimension_numbers<[1], [0], [0], [1], [0, 0, 1, 1], [], []>} : vector<16x128xbf16>, vector<128x128xbf16>, vector<16x128xf32> -> vector<16x128xf32>
    %c0_32 = arith.constant 0 : index
    %c0_33 = arith.constant 0 : index
    %44 = vector.load %arg13[%c0_32, %c0_33] : memref<1x128xf32, #tpu.memory_space<vmem>>, vector<1x128xf32>
    %45 = vector.broadcast %44 : vector<1x128xf32> to vector<16x128xf32>
    %46 = arith.addf %43, %45 : vector<16x128xf32>
    %cst_34 = arith.constant 0.000000e+00 : f32
    %47 = vector.broadcast %cst_34 : f32 to vector<16x128xf32>
    %48 = arith.maximumf %46, %47 : vector<16x128xf32>
    %49 = arith.truncf %48 : vector<16x128xf32> to vector<16x128xbf16>
    %c0_35 = arith.constant 0 : index
    %c0_36 = arith.constant 0 : index
    %50 = vector.load %arg14[%c0_35, %c0_36] : memref<128x128xbf16, #tpu.memory_space<vmem>>, vector<128x128xbf16>
    %cst_37 = arith.constant dense<0.000000e+00> : vector<16x128xf32>
    %51 = tpu.matmul %49, %50, %cst_37 {dimension_numbers = #tpu.dot_dimension_numbers<[1], [0], [0], [1], [0, 0, 1, 1], [], []>} : vector<16x128xbf16>, vector<128x128xbf16>, vector<16x128xf32> -> vector<16x128xf32>
    %c0_38 = arith.constant 0 : index
    %c0_39 = arith.constant 0 : index
    %52 = vector.load %arg15[%c0_38, %c0_39] : memref<1x128xf32, #tpu.memory_space<vmem>>, vector<1x128xf32>
    %53 = vector.broadcast %52 : vector<1x128xf32> to vector<16x128xf32>
    %54 = arith.addf %51, %53 : vector<16x128xf32>
    %c0_40 = arith.constant 0 : index
    %c0_41 = arith.constant 0 : index
    %55 = vector.load %arg16[%c0_40, %c0_41] : memref<16x128xf32, #tpu.memory_space<vmem>>, vector<16x128xf32>
    tpu.vector_store %arg16[%c0_40, %c0_41], %54 {strides = array<i32>} : memref<16x128xf32, #tpu.memory_space<vmem>>, vector<16x128xf32>,
    return
  }
  func.func @transform_0(%arg0: i32) -> (i32, i32) {
    %c0_i32 = arith.constant 0 : i32
    %c0_i32_0 = arith.constant 0 : i32
    return %arg0, %c0_i32 : i32, i32
  }
  func.func @transform_1(%arg0: i32) -> (i32, i32) {
    %c0_i32 = arith.constant 0 : i32
    %c0_i32_0 = arith.constant 0 : i32
    %c0_i32_1 = arith.constant 0 : i32
    return %c0_i32, %c0_i32_0 : i32, i32
  }
  func.func @transform_2(%arg0: i32) -> (i32, i32) {
    %c0_i32 = arith.constant 0 : i32
    %c0_i32_0 = arith.constant 0 : i32
    %c0_i32_1 = arith.constant 0 : i32
    return %c0_i32, %c0_i32_0 : i32, i32
  }
  func.func @transform_3(%arg0: i32) -> (i32, i32) {
    %c0_i32 = arith.constant 0 : i32
    %c0_i32_0 = arith.constant 0 : i32
    %c0_i32_1 = arith.constant 0 : i32
    return %c0_i32, %c0_i32_0 : i32, i32
  }
  func.func @transform_4(%arg0: i32) -> (i32, i32) {
    %c0_i32 = arith.constant 0 : i32
    %c0_i32_0 = arith.constant 0 : i32
    %c0_i32_1 = arith.constant 0 : i32
    return %c0_i32, %c0_i32_0 : i32, i32
  }
  func.func @transform_5(%arg0: i32) -> (i32, i32) {
    %c0_i32 = arith.constant 0 : i32
    %c0_i32_0 = arith.constant 0 : i32
    %c0_i32_1 = arith.constant 0 : i32
    return %c0_i32, %c0_i32_0 : i32, i32
  }
  func.func @transform_6(%arg0: i32) -> (i32, i32) {
    %c0_i32 = arith.constant 0 : i32
    %c0_i32_0 = arith.constant 0 : i32
    %c0_i32_1 = arith.constant 0 : i32
    return %c0_i32, %c0_i32_0 : i32, i32
  }
  func.func @transform_7(%arg0: i32) -> (i32, i32) {
    %c0_i32 = arith.constant 0 : i32
    %c0_i32_0 = arith.constant 0 : i32
    %c0_i32_1 = arith.constant 0 : i32
    return %c0_i32, %c0_i32_0 : i32, i32
  }
  func.func @transform_8(%arg0: i32) -> (i32, i32) {
    %c0_i32 = arith.constant 0 : i32
    %c0_i32_0 = arith.constant 0 : i32
    %c0_i32_1 = arith.constant 0 : i32
    return %c0_i32, %c0_i32_0 : i32, i32
  }
  func.func @transform_9(%arg0: i32) -> (i32, i32) {
    %c0_i32 = arith.constant 0 : i32
    %c0_i32_0 = arith.constant 0 : i32
    %c0_i32_1 = arith.constant 0 : i32
    return %c0_i32, %c0_i32_0 : i32, i32
  }
  func.func @transform_10(%arg0: i32) -> (i32, i32) {
    %c0_i32 = arith.constant 0 : i32
    %c0_i32_0 = arith.constant 0 : i32
    %c0_i32_1 = arith.constant 0 : i32
    return %c0_i32, %c0_i32_0 : i32, i32
  }
  func.func @transform_11(%arg0: i32) -> (i32, i32) {
    %c0_i32 = arith.constant 0 : i32
    %c0_i32_0 = arith.constant 0 : i32
    %c0_i32_1 = arith.constant 0 : i32
    return %c0_i32, %c0_i32_0 : i32, i32
  }
  func.func @transform_12(%arg0: i32) -> (i32, i32) {
    %c0_i32 = arith.constant 0 : i32
    %c0_i32_0 = arith.constant 0 : i32
    %c0_i32_1 = arith.constant 0 : i32
    return %c0_i32, %c0_i32_0 : i32, i32
  }
  func.func @transform_13(%arg0: i32) -> (i32, i32) {
    %c0_i32 = arith.constant 0 : i32
    %c0_i32_0 = arith.constant 0 : i32
    %c0_i32_1 = arith.constant 0 : i32
    return %c0_i32, %c0_i32_0 : i32, i32
  }
  func.func @transform_14(%arg0: i32) -> (i32, i32) {
    %c0_i32 = arith.constant 0 : i32
    %c0_i32_0 = arith.constant 0 : i32
    %c0_i32_1 = arith.constant 0 : i32
    return %c0_i32, %c0_i32_0 : i32, i32
  }
  func.func @transform_15(%arg0: i32) -> (i32, i32) {
    %c0_i32 = arith.constant 0 : i32
    %c0_i32_0 = arith.constant 0 : i32
    return %arg0, %c0_i32 : i32, i32
  }
}

</mosaic_0001>

<bundles_post_ra>
// kernel: tpu_custom_call.1
= control target key start
LH: loop header
LB: loop body
LE: loop exit
PB: predicated region body
PF: predicated region fallthrough
CT: control target
= control target key end

     0   :  { %20 = vsyncpa [#allocation3], 0  ;;  %s2538_s0 = inlined_call_operand.hbm [shape: f32[16,256], index: 0, kind: input, shape index: {}]   ;;  %s2539_s1 = inlined_call_operand.vmem [shape: f32[1,256], index: 1, kind: input, shape index: {}]   ;;  %s2540_s2 = inlined_call_operand.hbm [shape: f32[1,256], index: 2, kind: input, shape index: {}]   ;;  %s2541_s3 = inlined_call_operand.hbm [shape: bf16[256,512], index: 3, kind: input, shape index: {}]   ;;  %s2542_s4 = inlined_call_operand.vmem [shape: f32[1,512], index: 4, kind: input, shape index: {}]   ;;  %s2543_s5 = inlined_call_operand.hbm [shape: bf16[512,128], index: 5, kind: input, shape index: {}]   ;;  %s2544_s6 = inlined_call_operand.vmem [shape: f32[1,128], index: 6, kind: input, shape index: {}]   ;;  %s2545_s7 = inlined_call_operand.hbm [shape: bf16[128,128], index: 7, kind: input, shape index: {}]   ;;  %s2546_s8 = inlined_call_operand.vmem [shape: f32[1,128], index: 8, kind: input, shape index: {}]   ;;  %s2547_s9 = inlined_call_operand.hbm [shape: bf16[128,128], index: 9, kind: input, shape index: {}]   ;;  %s2548_s10 = inlined_call_operand.vmem [shape: f32[1,128], index: 10, kind: input, shape index: {}]   ;;  %s2549_s11 = inlined_call_operand.hbm [shape: bf16[128,128], index: 11, kind: input, shape index: {}]   ;;  %s2550_s12 = inlined_call_operand.vmem [shape: f32[1,128], index: 12, kind: input, shape index: {}]   ;;  %s2551_s13 = inlined_call_operand.hbm [shape: bf16[128,128], index: 13, kind: input, shape index: {}]   ;;  %s2552_s14 = inlined_call_operand.vmem [shape: f32[1,128], index: 14, kind: input, shape index: {}]   ;;  %s2553_s15 = inlined_call_operand.hbm [shape: f32[16,128], index: 15, kind: output, shape index: {}]  }
   0x1   :  { %21 = vsyncpa [#allocation6], 0 }
   0x2   :  { %22 = vsyncpa [#allocation9], 0 }
   0x3   :  { %23 = vsyncpa [#allocation12], 0 }
   0x4   :  { %24 = vsyncpa [#allocation15], 0 }
   0x5   :  { %25 = vsyncpa [#allocation4], 0  ;;  %s2213_s18 = smov [#allocation5]   ;;  %s2214_s20 = smov [#allocation8]  }
   0x6   :  { %s46_s19 = sshll.u32 %s2213_s18, 4  ;;  %s69_s21 = sshll.u32 %s2214_s20, 4  ;;  %s47_s19 = int_to_ptr.vmem [resolvable:$true] %s46_s19  ;;  %s2310_s21 = int_to_ptr.vmem [resolvable:$true] %s69_s21 }
   0x7   :  { %s2003_s24 = scalar_lea.hbm %s2540_s2, 32 }
   0x8   :  { %p2004_p0 = scmp.ne.s32.totalorder %s2540_s2, %s2003_s24  ;;  %p2007_p1 = scmp.lt.u32.totalorder %s2003_s24, %s2540_s2 }
   0xa   :  { %p2009_p2 = pnand %p2007_p1, %p2004_p0 }
   0xc   :  { %2012 = shalt.err (!%p2009_p2)
}
   0xd   :  { %s2013_s29 = scalar_lea.vmem %s47_s19, 32  ;;  %p2018_p4 = scmp.lt.s32.totalorder %s47_s19, %s47_s19 }
   0xe   :  { %p2014_p3 = scmp.ne.s32.totalorder %s47_s19, %s2013_s29  ;;  %p2019_p5 = scmp.lt.s32.totalorder %s2013_s29, %s2013_s29 }
  0x10   :  { %p2020_p6 = por %p2019_p5, %p2018_p4 }
  0x12   :  { %p2021_p7 = pnand %p2020_p6, %p2014_p3 }
  0x14   :  { %2024 = shalt.err (!%p2021_p7)
}
  0x15   :  { %49 = dma.hbm_to_vmem [thread:$0]  %s2540_s2, 32, %s47_s19, [#allocation6]  }
  0x16   :  { %s2025_s20 = scalar_lea.hbm %s2543_s5, 4096 }
  0x17   :  { %p2026_p8 = scmp.ne.s32.totalorder %s2543_s5, %s2025_s20  ;;  %p2029_p9 = scmp.lt.u32.totalorder %s2025_s20, %s2543_s5 }
  0x19   :  { %p2031_p10 = pnand %p2029_p9, %p2026_p8 }
  0x1b   :  { %2034 = shalt.err (!%p2031_p10)
}
  0x1c   :  { %s2035_s26 = scalar_lea.vmem %s2310_s21, 4096  ;;  %p2040_p12 = scmp.lt.s32.totalorder %s2310_s21, %s2310_s21 }
  0x1d   :  { %p2036_p11 = scmp.ne.s32.totalorder %s2310_s21, %s2035_s26  ;;  %p2041_p13 = scmp.lt.s32.totalorder %s2035_s26, %s2035_s26 }
  0x1f   :  { %p2042_p0 = por %p2041_p13, %p2040_p12 }
  0x21   :  { %p2043_p1 = pnand %p2042_p0, %p2036_p11 }
  0x23   :  { %2046 = shalt.err (!%p2043_p1)
}
  0x24   :  { %s2215_s2 = smov 64   ;;  %s2216_s19 = smov 4  }
  0x25   :  { %75 = dma.hbm_to_vmem [thread:$0]  %s2543_s5, 4096, %s2310_s21, [#allocation9], %s2215_s2, %s2215_s2, %s2216_s19  }
  0x26   :  { %s2217_s29 = smov [#allocation11]   ;;  %s2218_s16 = smov [#allocation2]  }
  0x27   :  { %s97_s30 = sshll.u32 %s2217_s29, 4  ;;  %s31_s17 = sshll.u32 %s2218_s16, 4  ;;  %s98_s30 = int_to_ptr.vmem [resolvable:$true] %s97_s30  ;;  %s2344_s17 = int_to_ptr.vmem [resolvable:$true] %s31_s17 }
  0x28   :  { %s2047_s22 = scalar_lea.hbm %s2547_s9, 1024 }
  0x29   :  { %p2048_p2 = scmp.ne.s32.totalorder %s2547_s9, %s2047_s22  ;;  %p2051_p3 = scmp.lt.u32.totalorder %s2047_s22, %s2547_s9 }
  0x2b   :  { %p2053_p4 = pnand %p2051_p3, %p2048_p2 }
  0x2d   :  { %2056 = shalt.err (!%p2053_p4)
}
  0x2e   :  { %s2057_s5 = scalar_lea.vmem %s98_s30, 1024  ;;  %p2062_p6 = scmp.lt.s32.totalorder %s98_s30, %s98_s30 }
  0x2f   :  { %p2058_p5 = scmp.ne.s32.totalorder %s98_s30, %s2057_s5  ;;  %p2063_p7 = scmp.lt.s32.totalorder %s2057_s5, %s2057_s5 }
  0x31   :  { %p2064_p8 = por %p2063_p7, %p2062_p6 }
  0x33   :  { %p2065_p9 = pnand %p2064_p8, %p2058_p5 }
  0x35   :  { %2068 = shalt.err (!%p2065_p9)
}
  0x36   :  { %103 = dma.hbm_to_vmem [thread:$0]  %s2547_s9, 1024, %s98_s30, [#allocation12], %s2215_s2, %s2215_s2, %s2216_s19  }
  0x37   :  { %s2069_s16 = scalar_lea.hbm %s2538_s0, 512 }
  0x38   :  { %p2070_p10 = scmp.ne.s32.totalorder %s2538_s0, %s2069_s16  ;;  %p2073_p11 = scmp.lt.u32.totalorder %s2069_s16, %s2538_s0 }
  0x3a   :  { %p2075_p12 = pnand %p2073_p11, %p2070_p10 }
  0x3c   :  { %2078 = shalt.err (!%p2075_p12)
}
  0x3d   :  { %s2079_s24 = scalar_lea.vmem %s2344_s17, 512  ;;  %p2084_p0 = scmp.lt.s32.totalorder %s2344_s17, %s2344_s17 }
  0x3e   :  { %p2080_p13 = scmp.ne.s32.totalorder %s2344_s17, %s2079_s24  ;;  %p2085_p1 = scmp.lt.s32.totalorder %s2079_s24, %s2079_s24 }
  0x40   :  { %p2086_p2 = por %p2085_p1, %p2084_p0 }
  0x42   :  { %p2087_p3 = pnand %p2086_p2, %p2080_p13 }
  0x44   :  { %2090 = shalt.err (!%p2087_p3)
}
  0x45   :  { %s2219_s9 = smov 256   ;;  %s2220_s30 = smov 16  }
  0x46   :  { %37 = dma.hbm_to_vmem [thread:$0]  %s2538_s0, 512, %s2344_s17, [#allocation3], %s2219_s9, %s2219_s9, %s2220_s30  }
  0x47   :  { %s2221_s5 = smov [#allocation7]   ;;  %s2222_s27 = smov [#allocation10]  }
  0x48   :  { %s55_s21 = sshll.u32 %s2221_s5, 4  ;;  %s83_s28 = sshll.u32 %s2222_s27, 4  ;;  %s56_s21 = int_to_ptr.vmem [resolvable:$true] %s55_s21  ;;  %s2378_s28 = int_to_ptr.vmem [resolvable:$true] %s83_s28 }
  0x49   :  { %s2091_s18 = scalar_lea.hbm %s2541_s3, 8192 }
  0x4a   :  { %p2092_p4 = scmp.ne.s32.totalorder %s2541_s3, %s2091_s18  ;;  %p2095_p5 = scmp.lt.u32.totalorder %s2091_s18, %s2541_s3 }
  0x4c   :  { %p2097_p6 = pnand %p2095_p5, %p2092_p4 }
  0x4e   :  { %2100 = shalt.err (!%p2097_p6)
}
  0x4f   :  { %s2101_s0 = scalar_lea.vmem %s56_s21, 8192  ;;  %p2106_p8 = scmp.lt.s32.totalorder %s56_s21, %s56_s21 }
  0x50   :  { %p2102_p7 = scmp.ne.s32.totalorder %s56_s21, %s2101_s0  ;;  %p2107_p9 = scmp.lt.s32.totalorder %s2101_s0, %s2101_s0 }
  0x52   :  { %p2108_p10 = por %p2107_p9, %p2106_p8 }
  0x54   :  { %p2109_p11 = pnand %p2108_p10, %p2102_p7 }
  0x56   :  { %2112 = shalt.err (!%p2109_p11)
}
  0x57   :  { %61 = dma.hbm_to_vmem [thread:$0]  %s2541_s3, 8192, %s56_s21, [#allocation6], %s2219_s9, %s2219_s9, %s2220_s30  }
  0x58   :  { %s2113_s27 = scalar_lea.hbm %s2545_s7, 1024 }
  0x59   :  { %p2114_p12 = scmp.ne.s32.totalorder %s2545_s7, %s2113_s27  ;;  %p2117_p13 = scmp.lt.u32.totalorder %s2113_s27, %s2545_s7 }
  0x5b   :  { %p2119_p0 = pnand %p2117_p13, %p2114_p12 }
  0x5d   :  { %2122 = shalt.err (!%p2119_p0)
}
  0x5e   :  { %s2123_s22 = scalar_lea.vmem %s2378_s28, 1024  ;;  %p2128_p2 = scmp.lt.s32.totalorder %s2378_s28, %s2378_s28 }
  0x5f   :  { %p2124_p1 = scmp.ne.s32.totalorder %s2378_s28, %s2123_s22  ;;  %p2129_p3 = scmp.lt.s32.totalorder %s2123_s22, %s2123_s22 }
  0x61   :  { %p2130_p4 = por %p2129_p3, %p2128_p2 }
  0x63   :  { %p2131_p5 = pnand %p2130_p4, %p2124_p1 }
  0x65   :  { %2134 = shalt.err (!%p2131_p5)
}
  0x66   :  { %89 = dma.hbm_to_vmem [thread:$0]  %s2545_s7, 1024, %s2378_s28, [#allocation9], %s2215_s2, %s2215_s2, %s2216_s19  }
  0x67   :  { %s2223_s30 = smov [#allocation13]   ;;  %s2224_s23 = smov [#allocation14]  }
  0x68   :  { %s111_s21 = sshll.u32 %s2223_s30, 4  ;;  %s125_s24 = sshll.u32 %s2224_s23, 4  ;;  %s112_s21 = int_to_ptr.vmem [resolvable:$true] %s111_s21  ;;  %s2412_s24 = int_to_ptr.vmem [resolvable:$true] %s125_s24 }
  0x69   :  { %s2135_s25 = scalar_lea.hbm %s2549_s11, 1024 }
  0x6a   :  { %p2136_p6 = scmp.ne.s32.totalorder %s2549_s11, %s2135_s25  ;;  %p2139_p7 = scmp.lt.u32.totalorder %s2135_s25, %s2549_s11 }
  0x6c   :  { %p2141_p8 = pnand %p2139_p7, %p2136_p6 }
  0x6e   :  { %2144 = shalt.err (!%p2141_p8)
}
  0x6f   :  { %s2145_s7 = scalar_lea.vmem %s112_s21, 1024  ;;  %p2150_p10 = scmp.lt.s32.totalorder %s112_s21, %s112_s21 }
  0x70   :  { %p2146_p9 = scmp.ne.s32.totalorder %s112_s21, %s2145_s7  ;;  %p2151_p11 = scmp.lt.s32.totalorder %s2145_s7, %s2145_s7 }
  0x72   :  { %p2152_p12 = por %p2151_p11, %p2150_p10 }
  0x74   :  { %p2153_p13 = pnand %p2152_p12, %p2146_p9 }
  0x76   :  { %2156 = shalt.err (!%p2153_p13)
}
  0x77   :  { %117 = dma.hbm_to_vmem [thread:$0]  %s2549_s11, 1024, %s112_s21, [#allocation12], %s2215_s2, %s2215_s2, %s2216_s19  }
  0x78   :  { %s2157_s22 = scalar_lea.hbm %s2551_s13, 1024 }
  0x79   :  { %p2158_p0 = scmp.ne.s32.totalorder %s2551_s13, %s2157_s22  ;;  %p2161_p1 = scmp.lt.u32.totalorder %s2157_s22, %s2551_s13 }
  0x7b   :  { %p2163_p2 = pnand %p2161_p1, %p2158_p0 }
  0x7d   :  { %2166 = shalt.err (!%p2163_p2)
}
  0x7e   :  { %s2167_s0 = scalar_lea.vmem %s2412_s24, 1024  ;;  %p2172_p4 = scmp.lt.s32.totalorder %s2412_s24, %s2412_s24 }
  0x7f   :  { %p2168_p3 = scmp.ne.s32.totalorder %s2412_s24, %s2167_s0  ;;  %p2173_p5 = scmp.lt.s32.totalorder %s2167_s0, %s2167_s0 }
  0x81   :  { %p2174_p6 = por %p2173_p5, %p2172_p4 }
  0x83   :  { %p2175_p7 = pnand %p2174_p6, %p2168_p3 }
  0x85   :  { %2178 = shalt.err (!%p2175_p7)
}
  0x86   :  { %131 = dma.hbm_to_vmem [thread:$0]  %s2551_s13, 1024, %s2412_s24, [#allocation15], %s2215_s2, %s2215_s2, %s2216_s19  }
  0x87   :  { %2201 = dma.done.wait [#allocation3], 512  }
  0x88   :  { %2202 = vsyncadd [#allocation3], 4294966784 }
  0x89   :  { %2203 = dma.done.wait [#allocation6], 8224  }
  0x8a   :  { %2204 = vsyncadd [#allocation6], 4294959072 }
  0x8b   :  { %2205 = dma.done.wait [#allocation9], 5120  }
  0x8c   :  { %2206 = vsyncadd [#allocation9], 4294962176 }
  0x8d   :  { %2207 = dma.done.wait [#allocation12], 2048  }
  0x8e   :  { %2208 = vsyncadd [#allocation12], 4294965248 }
  0x8f   :  { %2209 = dma.done.wait [#allocation15], 1024  }
  0x90   :  { %2210 = vsyncadd [#allocation15], 4294966272  ;;  %v1843_v0 = vld [vmem:[#allocation7 + $0x4] ss:$16 sps:$4 sm:$0xff]   ;;  %v1845_v1 = vld [vmem:[#allocation7 + $0xc] ss:$16 sps:$4 sm:$0xff]   ;;  %v165_v37 = vlaneseq }
  0x91   :  { %607 = vmatprep.subr.bf16.mxu0 %v1843_v0  ;;  %v1847_v2 = vld [vmem:[#allocation7] ss:$16 sps:$4 sm:$0xff]   ;;  %v1848_v3 = vld [vmem:[#allocation7 + $0x8] ss:$16 sps:$4 sm:$0xff]   ;;  %650 = vmatprep.subr.bf16.mxu1 %v1845_v1  ;;  %v1849_v4 = vld [vmem:[#allocation7 + $0x24] ss:$16 sps:$4 sm:$0xff]  }
  0x92   :  { %608 = vmatpush1.bf16.msra.mxu0 %v1847_v2  ;;  %651 = vmatpush1.bf16.msra.mxu1 %v1848_v3  ;;  %v1851_v5 = vld [vmem:[#allocation7 + $0x2c] ss:$16 sps:$4 sm:$0xff]   ;;  %v1853_v6 = vld [vmem:[#allocation7 + $0x20] ss:$16 sps:$4 sm:$0xff]   ;;  %v1854_v7 = vld [vmem:[#allocation7 + $0x28] ss:$16 sps:$4 sm:$0xff]  }
  0x93   :  { %609 = vmatprep.subr.bf16.mxu0 %v1849_v4  ;;  %652 = vmatprep.subr.bf16.mxu1 %v1851_v5  ;;  %v1855_v8 = vld [vmem:[#allocation7 + $0x44] ss:$16 sps:$4 sm:$0xff]   ;;  %v1857_v9 = vld [vmem:[#allocation7 + $0x4c] ss:$16 sps:$4 sm:$0xff]   ;;  %v1859_v10 = vld [vmem:[#allocation7 + $0x40] ss:$16 sps:$4 sm:$0xff]  }
  0x94   :  { %v1860_v11 = vld [vmem:[#allocation7 + $0x48] ss:$16 sps:$4 sm:$0xff]   ;;  %v1861_v12 = vld [vmem:[#allocation7 + $0x64] ss:$16 sps:$4 sm:$0xff]   ;;  %v1863_v13 = vld [vmem:[#allocation7 + $0x6c] ss:$16 sps:$4 sm:$0xff]  }
  0x95   :  { %v1865_v14 = vld [vmem:[#allocation7 + $0x60] ss:$16 sps:$4 sm:$0xff]   ;;  %v1866_v15 = vld [vmem:[#allocation7 + $0x68] ss:$16 sps:$4 sm:$0xff]   ;;  %v1867_v16 = vld [vmem:[#allocation7 + $0x84] ss:$16 sps:$4 sm:$0xff]  }
  0x96   :  { %610 = vmatpush1.bf16.msra.mxu0 %v1853_v6  ;;  %653 = vmatpush1.bf16.msra.mxu1 %v1854_v7  ;;  %v1869_v17 = vld [vmem:[#allocation7 + $0x8c] ss:$16 sps:$4 sm:$0xff]   ;;  %v1871_v18 = vld [vmem:[#allocation7 + $0x80] ss:$16 sps:$4 sm:$0xff]   ;;  %v1872_v19 = vld [vmem:[#allocation7 + $0x88] ss:$16 sps:$4 sm:$0xff]  }
  0x97   :  { %611 = vmatprep.subr.bf16.mxu0 %v1855_v8  ;;  %654 = vmatprep.subr.bf16.mxu1 %v1857_v9  ;;  %v1873_v20 = vld [vmem:[#allocation7 + $0xa4] ss:$16 sps:$4 sm:$0xff]   ;;  %v1875_v21 = vld [vmem:[#allocation7 + $0xac] ss:$16 sps:$4 sm:$0xff]   ;;  %v1877_v22 = vld [vmem:[#allocation7 + $0xa0] ss:$16 sps:$4 sm:$0xff]  }
  0x98   :  { %v1878_v23 = vld [vmem:[#allocation7 + $0xa8] ss:$16 sps:$4 sm:$0xff]   ;;  %v1879_v24 = vld [vmem:[#allocation7 + $0xc4] ss:$16 sps:$4 sm:$0xff]   ;;  %v1881_v25 = vld [vmem:[#allocation7 + $0xcc] ss:$16 sps:$4 sm:$0xff]  }
  0x99   :  { %v1883_v26 = vld [vmem:[#allocation7 + $0xc0] ss:$16 sps:$4 sm:$0xff]   ;;  %v1884_v27 = vld [vmem:[#allocation7 + $0xc8] ss:$16 sps:$4 sm:$0xff]   ;;  %v1885_v28 = vld [vmem:[#allocation7 + $0xe4] ss:$16 sps:$4 sm:$0xff]  }
  0x9a   :  { %612 = vmatpush1.bf16.msra.mxu0 %v1859_v10  ;;  %655 = vmatpush1.bf16.msra.mxu1 %v1860_v11  ;;  %v1887_v29 = vld [vmem:[#allocation7 + $0xec] ss:$16 sps:$4 sm:$0xff]   ;;  %v1889_v30 = vld [vmem:[#allocation7 + $0xe0] ss:$16 sps:$4 sm:$0xff]   ;;  %v1890_v31 = vld [vmem:[#allocation7 + $0xe8] ss:$16 sps:$4 sm:$0xff]  }
  0x9b   :  { %613 = vmatprep.subr.bf16.mxu0 %v1861_v12  ;;  %656 = vmatprep.subr.bf16.mxu1 %v1863_v13  ;;  %v1891_v32 = vld [vmem:[#allocation7 + $0x104] ss:$16 sps:$4 sm:$0xff]   ;;  %v1893_v33 = vld [vmem:[#allocation7 + $0x10c] ss:$16 sps:$4 sm:$0xff]   ;;  %v1895_v34 = vld [vmem:[#allocation7 + $0x100] ss:$16 sps:$4 sm:$0xff]  }
  0x9c   :  { %v1896_v35 = vld [vmem:[#allocation7 + $0x108] ss:$16 sps:$4 sm:$0xff]   ;;  %v1897_v36 = vld [vmem:[#allocation7 + $0x124] ss:$16 sps:$4 sm:$0xff]   ;;  %v1899_v38 = vld [vmem:[#allocation7 + $0x12c] ss:$16 sps:$4 sm:$0xff]  }
  0x9d   :  { %v1901_v39 = vld [vmem:[#allocation7 + $0x120] ss:$16 sps:$4 sm:$0xff]   ;;  %v1902_v40 = vld [vmem:[#allocation7 + $0x128] ss:$16 sps:$4 sm:$0xff]   ;;  %v1903_v41 = vld [vmem:[#allocation7 + $0x144] ss:$16 sps:$4 sm:$0xff]  }
  0x9e   :  { %614 = vmatpush1.bf16.msra.mxu0 %v1865_v14  ;;  %657 = vmatpush1.bf16.msra.mxu1 %v1866_v15  ;;  %v2449_v42 = vshrl.u32 %v165_v37, 7  ;;  %v1905_v43 = vld [vmem:[#allocation7 + $0x14c] ss:$16 sps:$4 sm:$0xff]   ;;  %v1907_v44 = vld [vmem:[#allocation7 + $0x140] ss:$16 sps:$4 sm:$0xff]   ;;  %vm2226_vm0 = vmmov 0  }
  0x9f   :  { %615 = vmatprep.subr.bf16.mxu0 %v1867_v16  ;;  %658 = vmatprep.subr.bf16.mxu1 %v1869_v17  ;;  %v1908_v45 = vld [vmem:[#allocation7 + $0x148] ss:$16 sps:$4 sm:$0xff]   ;;  %v1909_v46 = vld [vmem:[#allocation7 + $0x164] ss:$16 sps:$4 sm:$0xff]   ;;  %v1911_v48 = vld [vmem:[#allocation7 + $0x16c] ss:$16 sps:$4 sm:$0xff]  }
  0xa0   :  { %v2452_v47 = vsub.s32 1, %v2449_v42  ;;  %v1913_v49 = vld [vmem:[#allocation7 + $0x160] ss:$16 sps:$4 sm:$0xff]   ;;  %v160_v50 = vld [vmem:[#allocation2 + $0x8] sm:$0xff]  ;;  %v162_v51 = vld [vmem:[#allocation2 + $0x18] sm:$0xff]  ;;  %v2458_v53 = vsub.s32 0, %v2449_v42 }
  0xa1   :  { %v163_v52 = vld [vmem:[%s2539_s1] sm:$0x3]  ;;  %v1914_v55 = vld [vmem:[#allocation7 + $0x168] ss:$16 sps:$4 sm:$0xff]   ;;  %v1915_v56 = vld [vmem:[#allocation7 + $0x184] ss:$16 sps:$4 sm:$0xff]  }
  0xa2   :  { %616 = vmatpush1.bf16.msra.mxu0 %v1871_v18  ;;  %659 = vmatpush1.bf16.msra.mxu1 %v1872_v19  ;;  %v179_v54 = vld [vmem:[#allocation5] sm:$0x3]  ;;  %v172_v57 = vrot.slane %v163_v52, %v2452_v47  ;;  %v1919_v60 = vld [vmem:[#allocation7 + $0x180] ss:$16 sps:$4 sm:$0xff]   ;;  %v1920_v61 = vld [vmem:[#allocation7 + $0x188] ss:$16 sps:$4 sm:$0xff]   ;;  %v168_v1 = vrot.slane %v163_v52, %v2458_v53 }
  0xa3   :  { %617 = vmatprep.subr.bf16.mxu0 %v1873_v20  ;;  %660 = vmatprep.subr.bf16.mxu1 %v1875_v21  ;;  %v1917_v58 = vld [vmem:[#allocation7 + $0x18c] ss:$16 sps:$4 sm:$0xff]   ;;  %v188_v59 = vrot.slane %v179_v54, %v2452_v47  ;;  %v1921_v0 = vld [vmem:[#allocation7 + $0x1a4] ss:$16 sps:$4 sm:$0xff]   ;;  %v1925_v7 = vld [vmem:[#allocation7 + $0x1a0] ss:$16 sps:$4 sm:$0xff]   ;;  %v184_v11 = vrot.slane %v179_v54, %v2458_v53 }
  0xa4   :  { %v176_v62 = vmul.f32 %v172_v57, %v160_v50  ;;  %v178_v63 = vmul.f32 %v172_v57, %v162_v51  ;;  %v159_v2 = vld [vmem:[#allocation2] sm:$0xff]  ;;  %v161_v5 = vld [vmem:[#allocation2 + $0x10] sm:$0xff]  ;;  %v1926_v10 = vld [vmem:[#allocation7 + $0x1a8] ss:$16 sps:$4 sm:$0xff]   ;;  %s2227_s29 = smov [#allocation16]  }
  0xa5   :  { %v1923_v6 = vld [vmem:[#allocation7 + $0x1ac] ss:$16 sps:$4 sm:$0xff]   ;;  %v175_v12 = vmul.f32 %v168_v1, %v159_v2  ;;  %v177_v13 = vmul.f32 %v168_v1, %v161_v5  ;;  %v1927_v14 = vld [vmem:[#allocation7 + $0x1c4] ss:$16 sps:$4 sm:$0xff]   ;;  %v1931_v17 = vld [vmem:[#allocation7 + $0x1c0] ss:$16 sps:$4 sm:$0xff]  }
  0xa6   :  { %618 = vmatpush1.bf16.msra.mxu0 %v1877_v22  ;;  %661 = vmatpush1.bf16.msra.mxu1 %v1878_v23  ;;  %v192_v3 = vadd.f32 %v188_v59, %v176_v62  ;;  %v194_v4 = vadd.f32 %v188_v59, %v178_v63  ;;  %v1929_v16 = vld [vmem:[#allocation7 + $0x1cc] ss:$16 sps:$4 sm:$0xff]   ;;  %v1932_v18 = vld [vmem:[#allocation7 + $0x1c8] ss:$16 sps:$4 sm:$0xff]   ;;  %v1933_v21 = vld [vmem:[#allocation7 + $0x1e4] ss:$16 sps:$4 sm:$0xff]  }
  0xa7   :  { %619 = vmatprep.subr.bf16.mxu0 %v1879_v24  ;;  %662 = vmatprep.subr.bf16.mxu1 %v1881_v25  ;;  %v191_v19 = vadd.f32 %v184_v11, %v175_v12  ;;  %v193_v20 = vadd.f32 %v184_v11, %v177_v13  ;;  %v1935_v22 = vld [vmem:[#allocation7 + $0x1ec] ss:$16 sps:$4 sm:$0xff]   ;;  %v1937_v23 = vld [vmem:[#allocation7 + $0x1e0] ss:$16 sps:$4 sm:$0xff]   ;;  %v1938_v24 = vld [vmem:[#allocation7 + $0x1e8] ss:$16 sps:$4 sm:$0xff]  }
  0xa8   :  { %v196_v8 = vmax.f32 %v192_v3, 0.0  ;;  %v198_v9 = vmax.f32 %v194_v4, 0.0  ;;  %v1948_v37 = vld [vmem:[#allocation8 + $0xd0] sm:$0xff]   ;;  %v1959_v50 = vld [vmem:[#allocation8 + $0x68] sm:$0xff]   ;;  %v1967_v59 = vld [vmem:[#allocation8 + $0x78] sm:$0xff]   ;;  %v2225_v63 = vmov 0.0  }
  0xa9   :  { %v195_v25 = vmax.f32 %v191_v19, 0.0  ;;  %v1960_v51 = vld [vmem:[#allocation8 + $0xe8] sm:$0xff]   ;;  %v1965_v57 = vld [vmem:[#allocation8 + $0x30] sm:$0xff]   ;;  %v1970_v62 = vld [vmem:[#allocation8 + $0xb8] sm:$0xff]   ;;  %v281_v2 = vsub.s32 3, %v2449_v42  ;;  %s1517_s7 = sshll.u32 %s2227_s29, 4  ;;  %s1518_s7 = int_to_ptr.vmem [resolvable:$true] %s1517_s7 }
  0xaa   :  { %620 = vmatpush1.bf16.msra.mxu0 %v1883_v26  ;;  %663 = vmatpush1.bf16.msra.mxu1 %v1884_v27  ;;  %v200_v15 = vpack.c.bf16 %v198_v9, %v196_v8  ;;  %v197_v26 = vmax.f32 %v193_v20, 0.0  ;;  %v1939_v27 = vld [vmem:[#allocation8 + $0x40] sm:$0xff]   ;;  %v1961_v52 = vld [vmem:[#allocation8 + $0x28] sm:$0xff]   ;;  %p2184_p9 = scmp.lt.s32.totalorder %s1518_s7, %s1518_s7 }
  0xab   :  { %621 = vmatprep.subr.bf16.mxu0 %v1885_v28  ;;  %664 = vmatprep.subr.bf16.mxu1 %v1887_v29  ;;  %v1940_v28 = vld [vmem:[#allocation8 + $0xc0] sm:$0xff]   ;;  %v1962_v54 = vld [vmem:[#allocation8 + $0xa8] sm:$0xff]  }
  0xac   :  { %639 = vmatprep.mubr.bf16.mxu0 %v200_v15  ;;  %682 = vmatprep.mubr.bf16.mxu1 %v200_v15  ;;  %v1941_v29 = vld [vmem:[#allocation8] sm:$0xff]  }
  0xad   :  { %v265_v1 = vld [vmem:[%s2542_s4] sm:$0xf] }
  0xae   :  { %622 = vmatpush1.bf16.msra.mxu0 %v1889_v30  ;;  %665 = vmatpush1.bf16.msra.mxu1 %v1890_v31  ;;  %v199_v30 = vpack.c.bf16 %v197_v26, %v195_v25  ;;  %v1942_v31 = vld [vmem:[#allocation8 + $0x80] sm:$0xff]   ;;  %v270_v3 = vrot.slane %v265_v1, %v2458_v53  ;;  %v274_v5 = vrot.slane %v265_v1, %v2452_v47 }
  0xaf   :  { %623 = vmatprep.subr.bf16.mxu0 %v1891_v32  ;;  %666 = vmatprep.subr.bf16.mxu1 %v1893_v33  ;;  %v1943_v32 = vld [vmem:[#allocation8 + $0x48] sm:$0xff]  }
  0xb0   :  { %v1944_v33 = vld [vmem:[#allocation8 + $0xc8] sm:$0xff]  }
  0xb2   :  { %624 = vmatpush1.bf16.msra.mxu0 %v1895_v34  ;;  %667 = vmatpush1.bf16.msra.mxu1 %v1896_v35  ;;  %v1945_v34 = vld [vmem:[#allocation8 + $0x8] sm:$0xff]  }
  0xb3   :  { %625 = vmatprep.subr.bf16.mxu0 %v1897_v36  ;;  %668 = vmatprep.subr.bf16.mxu1 %v1899_v38  ;;  %v1946_v35 = vld [vmem:[#allocation8 + $0x88] sm:$0xff]   ;;  %v1947_v36 = vld [vmem:[#allocation8 + $0x50] sm:$0xff]  }
  0xb4   :  { %v1949_v38 = vld [vmem:[#allocation8 + $0x10] sm:$0xff]  }
  0xb6   :  { %626 = vmatpush1.bf16.msra.mxu0 %v1901_v39  ;;  %669 = vmatpush1.bf16.msra.mxu1 %v1902_v40  ;;  %v1950_v39 = vld [vmem:[#allocation8 + $0x90] sm:$0xff]   ;;  %v1951_v40 = vld [vmem:[#allocation8 + $0x58] sm:$0xff]  }
  0xb7   :  { %627 = vmatprep.subr.bf16.mxu0 %v1903_v41  ;;  %670 = vmatprep.subr.bf16.mxu1 %v1905_v43  ;;  %v1952_v41 = vld [vmem:[#allocation8 + $0xd8] sm:$0xff]  }
  0xb8   :  { %v1953_v43 = vld [vmem:[#allocation8 + $0x18] sm:$0xff]  }
  0xba   :  { %628 = vmatpush1.bf16.msra.mxu0 %v1907_v44  ;;  %671 = vmatpush1.bf16.msra.mxu1 %v1908_v45  ;;  %v1954_v44 = vld [vmem:[#allocation8 + $0x98] sm:$0xff]   ;;  %v1955_v45 = vld [vmem:[#allocation8 + $0x60] sm:$0xff]  }
  0xbb   :  { %629 = vmatprep.subr.bf16.mxu0 %v1909_v46  ;;  %672 = vmatprep.subr.bf16.mxu1 %v1911_v48  ;;  %v1956_v46 = vld [vmem:[#allocation8 + $0xe0] sm:$0xff]  }
  0xbc   :  { %v1957_v48 = vld [vmem:[#allocation8 + $0x20] sm:$0xff]  }
  0xbe   :  { %630 = vmatpush1.bf16.msra.mxu0 %v1913_v49  ;;  %673 = vmatpush1.bf16.msra.mxu1 %v1914_v55  ;;  %v1958_v49 = vld [vmem:[#allocation8 + $0xa0] sm:$0xff]   ;;  %v1963_v55 = vld [vmem:[#allocation8 + $0x70] sm:$0xff]  }
  0xbf   :  { %631 = vmatprep.subr.bf16.mxu0 %v1915_v56  ;;  %674 = vmatprep.subr.bf16.mxu1 %v1917_v58  ;;  %v1964_v56 = vld [vmem:[#allocation8 + $0xf0] sm:$0xff]  }
  0xc0   :  { %v1966_v58 = vld [vmem:[#allocation8 + $0xb0] sm:$0xff]  }
  0xc2   :  { %632 = vmatpush1.bf16.msra.mxu0 %v1919_v60  ;;  %675 = vmatpush1.bf16.msra.mxu1 %v1920_v61  ;;  %v1968_v60 = vld [vmem:[#allocation8 + $0xf8] sm:$0xff]  }
  0xc3   :  { %633 = vmatprep.subr.bf16.mxu0 %v1921_v0  ;;  %676 = vmatprep.subr.bf16.mxu1 %v1923_v6  ;;  %v1969_v61 = vld [vmem:[#allocation8 + $0x38] sm:$0xff]   ;;  %v277_v0 = vsub.s32 2, %v2449_v42  ;;  %v282_v6 = vrot.slane %v265_v1, %v281_v2 }
  0xc5   :  { %v278_v4 = vrot.slane %v265_v1, %v277_v0 }
  0xc6   :  { %634 = vmatpush1.bf16.msra.mxu0 %v1925_v7  ;;  %677 = vmatpush1.bf16.msra.mxu1 %v1926_v10 }
  0xc7   :  { %635 = vmatprep.subr.bf16.mxu0 %v1927_v14  ;;  %678 = vmatprep.subr.bf16.mxu1 %v1929_v16 }
  0xca   :  { %636 = vmatpush1.bf16.msra.mxu0 %v1931_v17  ;;  %679 = vmatpush1.bf16.msra.mxu1 %v1932_v18 }
  0xcb   :  { %637 = vmatprep.subr.bf16.mxu0 %v1933_v21  ;;  %680 = vmatprep.subr.bf16.mxu1 %v1935_v22 }
  0xce   :  { %638 = vmatpush1.bf16.msra.mxu0 %v1937_v23  ;;  %681 = vmatpush1.bf16.msra.mxu1 %v1938_v24 }
  0xcf   :  { %1666 = vmatprep.subr.bf16.mxu0 %v1939_v27  ;;  %1688 = vmatprep.subr.bf16.mxu1 %v1940_v28 }
  0xd1   :  { %640 = vmatmul.mubr.bf16.vlgmr.msra.gmra.mrb[0].mxu0 %v199_v30  ;;  %683 = vmatmul.mubr.bf16.vlgmr.msra.gmra.mrb[0].mxu1 %v199_v30 }
  0xd2   :  { %1667 = vmatpush3.bf16.msra.mxu0 %v1941_v29  ;;  %1689 = vmatpush3.bf16.msra.mxu1 %v1942_v31 }
  0xd3   :  { %1668 = vmatprep.subr.bf16.mxu0 %v1943_v32  ;;  %1690 = vmatprep.subr.bf16.mxu1 %v1944_v33  ;;  %v1971_v32 = vld [vmem:[#allocation10] sm:$0xff]   ;;  %v1972_v33 = vld [vmem:[#allocation10 + $0x8] sm:$0xff]  }
  0xd6   :  { %1669 = vmatpush3.bf16.msra.mxu0 %v1945_v34  ;;  %1691 = vmatpush3.bf16.msra.mxu1 %v1946_v35  ;;  %v1973_v34 = vld [vmem:[#allocation10 + $0x10] sm:$0xff]   ;;  %v1974_v35 = vld [vmem:[#allocation10 + $0x18] sm:$0xff]  }
  0xd7   :  { %1670 = vmatprep.subr.bf16.mxu0 %v1947_v36  ;;  %1692 = vmatprep.subr.bf16.mxu1 %v1948_v37  ;;  %v1975_v36 = vld [vmem:[#allocation10 + $0x20] sm:$0xff]   ;;  %v1976_v37 = vld [vmem:[#allocation10 + $0x28] sm:$0xff]  }
  0xda   :  { %1671 = vmatpush3.bf16.msra.mxu0 %v1949_v38  ;;  %1693 = vmatpush3.bf16.msra.mxu1 %v1950_v39  ;;  %v1977_v38 = vld [vmem:[#allocation10 + $0x30] sm:$0xff]   ;;  %v1978_v39 = vld [vmem:[#allocation10 + $0x38] sm:$0xff]  }
  0xdb   :  { %1672 = vmatprep.subr.bf16.mxu0 %v1951_v40  ;;  %1694 = vmatprep.subr.bf16.mxu1 %v1952_v41  ;;  %v1979_v40 = vld [vmem:[#allocation11] sm:$0xff]   ;;  %v1980_v41 = vld [vmem:[#allocation11 + $0x8] sm:$0xff]  }
  0xde   :  { %1673 = vmatpush3.bf16.msra.mxu0 %v1953_v43  ;;  %1695 = vmatpush3.bf16.msra.mxu1 %v1954_v44  ;;  %v1981_v43 = vld [vmem:[#allocation11 + $0x10] sm:$0xff]   ;;  %v1982_v44 = vld [vmem:[#allocation11 + $0x18] sm:$0xff]  }
  0xdf   :  { %1674 = vmatprep.subr.bf16.mxu0 %v1955_v45  ;;  %1696 = vmatprep.subr.bf16.mxu1 %v1956_v46  ;;  %v1983_v45 = vld [vmem:[#allocation11 + $0x20] sm:$0xff]   ;;  %v1984_v46 = vld [vmem:[#allocation11 + $0x28] sm:$0xff]  }
  0xe2   :  { %1675 = vmatpush3.bf16.msra.mxu0 %v1957_v48  ;;  %1697 = vmatpush3.bf16.msra.mxu1 %v1958_v49 }
  0xe3   :  { %1676 = vmatprep.subr.bf16.mxu0 %v1959_v50  ;;  %1698 = vmatprep.subr.bf16.mxu1 %v1960_v51  ;;  %v1597_v50 = vld [vmem:[%s2544_s6] ss:$0 sm:$0xff] }
  0xe6   :  { %1677 = vmatpush3.bf16.msra.mxu0 %v1961_v52  ;;  %1699 = vmatpush3.bf16.msra.mxu1 %v1962_v54 }
  0xe7   :  { %1678 = vmatprep.subr.bf16.mxu0 %v1963_v55  ;;  %1700 = vmatprep.subr.bf16.mxu1 %v1964_v56 }
  0xea   :  { %1679 = vmatpush3.bf16.msra.mxu0 %v1965_v57  ;;  %1701 = vmatpush3.bf16.msra.mxu1 %v1966_v58 }
  0xeb   :  { %1680 = vmatprep.subr.bf16.mxu0 %v1967_v59  ;;  %1702 = vmatprep.subr.bf16.mxu1 %v1968_v60 }
  0xee   :  { %1681 = vmatpush3.bf16.msra.mxu0 %v1969_v61  ;;  %1703 = vmatpush3.bf16.msra.mxu1 %v1970_v62 }
  0xef   :  { %1746 = vmatprep.subr.bf16.mxu0 %v2225_v63  ;;  %1766 = vmatprep.subr.bf16.mxu1 %v2225_v63 }
 0x1a4   :  { %v641_v7 = vpop.f32.mrb[0].mxu0  ;;  %v684_v8 = vpop.f32.mrb[0].mxu1 }
 0x1a5   :  { %v642_v9 = vadd.f32 %v641_v7, %v270_v3  ;;  %v685_v10 = vadd.f32 %v684_v8, %v278_v4  ;;  %v643_v11 = vpop.f32.mrb[1].mxu0  ;;  %v686_v12 = vpop.f32.mrb[1].mxu1  ;;  %v1986_v7 = vld [vmem:[#allocation11 + $0x38] sm:$0xff]   ;;  %v1987_v8 = vld [vmem:[#allocation13] sm:$0xff]  }
 0x1a6   :  { %v644_v13 = vadd.f32 %v643_v11, %v274_v5  ;;  %v687_v14 = vadd.f32 %v686_v12, %v282_v6  ;;  %v645_v15 = vpop.f32.mrb[2].mxu0  ;;  %v688_v16 = vpop.f32.mrb[2].mxu1  ;;  %v1990_v11 = vld [vmem:[#allocation13 + $0x18] sm:$0xff]   ;;  %v1991_v12 = vld [vmem:[#allocation13 + $0x20] sm:$0xff]  }
 0x1a7   :  { %v695_v17 = vmax.f32 %v685_v10, 0.0  ;;  %v646_v18 = vadd.f32 %v645_v15, %v270_v3  ;;  %v689_v19 = vadd.f32 %v688_v16, %v278_v4  ;;  %v647_v42 = vpop.f32.mrb[3].mxu0  ;;  %v690_v20 = vpop.f32.mrb[3].mxu1  ;;  %v693_v47 = vmax.f32 %v642_v9, 0.0  ;;  %v1988_v9 = vld [vmem:[#allocation13 + $0x8] sm:$0xff]   ;;  %v1989_v10 = vld [vmem:[#allocation13 + $0x10] sm:$0xff]  }
 0x1a8   :  { %v696_v53 = vmax.f32 %v687_v14, 0.0  ;;  %v648_v21 = vadd.f32 %v647_v42, %v274_v5  ;;  %v691_v22 = vadd.f32 %v690_v20, %v282_v6  ;;  %v694_v25 = vmax.f32 %v644_v13, 0.0  ;;  %v1985_v6 = vld [vmem:[#allocation11 + $0x30] sm:$0xff]   ;;  %v1992_v13 = vld [vmem:[#allocation13 + $0x28] sm:$0xff]   ;;  %v1630_v14 = vld [vmem:[%s2546_s8] ss:$0 sm:$0xff] }
 0x1a9   :  { %v697_v23 = vmax.f32 %v646_v18, 0.0  ;;  %v699_v24 = vmax.f32 %v689_v19, 0.0 }
 0x1aa   :  { %v698_v26 = vmax.f32 %v648_v21, 0.0  ;;  %v700_v27 = vmax.f32 %v691_v22, 0.0  ;;  %v1993_v22 = vld [vmem:[#allocation13 + $0x30] sm:$0xff]  }
 0x1ab   :  { %v701_v28 = vpack.c.bf16 %v697_v23, %v693_v47  ;;  %v703_v29 = vpack.c.bf16 %v699_v24, %v695_v17  ;;  %v1994_v47 = vld [vmem:[#allocation13 + $0x38] sm:$0xff]   ;;  %v1995_v23 = vld [vmem:[#allocation14] sm:$0xff]   ;;  %v1996_v24 = vld [vmem:[#allocation14 + $0x8] sm:$0xff]  }
 0x1ac   :  { %v702_v30 = vpack.c.bf16 %v698_v26, %v694_v25  ;;  %v704_v31 = vpack.c.bf16 %v700_v27, %v696_v53  ;;  %v1997_v25 = vld [vmem:[#allocation14 + $0x10] sm:$0xff]   ;;  %v1998_v26 = vld [vmem:[#allocation14 + $0x18] sm:$0xff]   ;;  %v1999_v27 = vld [vmem:[#allocation14 + $0x20] sm:$0xff]  }
 0x1ae   :  { %1000 = vmatprep.mubr.bf16.mxu0 %v702_v30  ;;  %1041 = vmatprep.mubr.bf16.mxu1 %v704_v31 }
 0x1af   :  { %1001 = vmatmul.mubr.bf16.vlgmr.msra.gmra.mrb[4].mxu0 %v701_v28  ;;  %1042 = vmatmul.mubr.bf16.vlgmr.msra.gmra.mrb[4].mxu1 %v703_v29  ;;  %v2000_v28 = vld [vmem:[#allocation14 + $0x28] sm:$0xff]   ;;  %v1639_v29 = vld [vmem:[%s2548_s10] ss:$0 sm:$0xff] }
 0x1b0   :  { %1747 = vmatpush3.bf16.msra.mxu0 %v1971_v32  ;;  %1762 = vmatprep.mubr.msk.bf16.mxu0 %vm2226_vm0, %v2225_v63 }
 0x1b1   :  { %1748 = vmatprep.subr.bf16.mxu0 %v2225_v63  ;;  %1782 = vmatprep.mubr.msk.bf16.mxu1 %vm2226_vm0, %v2225_v63 }
 0x1b2   :  { %1767 = vmatpush3.bf16.msra.mxu1 %v1979_v40  ;;  %v2002_v40 = vld [vmem:[#allocation14 + $0x38] sm:$0xff]  }
 0x1b3   :  { %1768 = vmatprep.subr.bf16.mxu1 %v2225_v63 }
 0x1b4   :  { %1749 = vmatpush3.bf16.msra.mxu0 %v1972_v33 }
 0x1b5   :  { %1750 = vmatprep.subr.bf16.mxu0 %v2225_v63 }
 0x1b6   :  { %1769 = vmatpush3.bf16.msra.mxu1 %v1980_v41  ;;  %v1648_v41 = vld [vmem:[%s2550_s12] ss:$0 sm:$0xff]  ;;  %s2179_s12 = scalar_lea.vmem %s1518_s7, 256 }
 0x1b7   :  { %1770 = vmatprep.subr.bf16.mxu1 %v2225_v63  ;;  %p2180_p8 = scmp.ne.s32.totalorder %s1518_s7, %s2179_s12  ;;  %p2185_p10 = scmp.lt.s32.totalorder %s2179_s12, %s2179_s12 }
 0x1b8   :  { %1751 = vmatpush3.bf16.msra.mxu0 %v1973_v34 }
 0x1b9   :  { %1752 = vmatprep.subr.bf16.mxu0 %v2225_v63  ;;  %p2186_p11 = por %p2185_p10, %p2184_p9 }
 0x1ba   :  { %1771 = vmatpush3.bf16.msra.mxu1 %v1981_v43 }
 0x1bb   :  { %1772 = vmatprep.subr.bf16.mxu1 %v2225_v63  ;;  %p2187_p12 = pnand %p2186_p11, %p2180_p8 }
 0x1bc   :  { %1753 = vmatpush3.bf16.msra.mxu0 %v1974_v35 }
 0x1bd   :  { %1754 = vmatprep.subr.bf16.mxu0 %v2225_v63 }
 0x1be   :  { %1773 = vmatpush3.bf16.msra.mxu1 %v1982_v44 }
 0x1bf   :  { %1774 = vmatprep.subr.bf16.mxu1 %v2225_v63 }
 0x1c0   :  { %1755 = vmatpush3.bf16.msra.mxu0 %v1975_v36 }
 0x1c1   :  { %1756 = vmatprep.subr.bf16.mxu0 %v2225_v63 }
 0x1c2   :  { %1775 = vmatpush3.bf16.msra.mxu1 %v1983_v45 }
 0x1c3   :  { %1776 = vmatprep.subr.bf16.mxu1 %v2225_v63 }
 0x1c4   :  { %1757 = vmatpush3.bf16.msra.mxu0 %v1976_v37 }
 0x1c5   :  { %1758 = vmatprep.subr.bf16.mxu0 %v2225_v63 }
 0x1c6   :  { %1777 = vmatpush3.bf16.msra.mxu1 %v1984_v46 }
 0x1c7   :  { %1778 = vmatprep.subr.bf16.mxu1 %v2225_v63 }
 0x1c8   :  { %1759 = vmatpush3.bf16.msra.mxu0 %v1977_v38 }
 0x1c9   :  { %1760 = vmatprep.subr.bf16.mxu0 %v2225_v63 }
 0x1ca   :  { %1779 = vmatpush3.bf16.msra.mxu1 %v1985_v6 }
 0x1cb   :  { %1780 = vmatprep.subr.bf16.mxu1 %v2225_v63 }
 0x1cc   :  { %1761 = vmatpush3.bf16.msra.mxu0 %v1978_v39  ;;  %v2001_v39 = vld [vmem:[#allocation14 + $0x30] sm:$0xff]  }
 0x1cd   :  { %1786 = vmatprep.subr.bf16.mxu0 %v2225_v63 }
 0x1ce   :  { %1781 = vmatpush3.bf16.msra.mxu1 %v1986_v7 }
 0x1cf   :  { %1806 = vmatprep.subr.bf16.mxu1 %v2225_v63 }
 0x282   :  { %v1682_v48 = vpop.f32.mrb[4].mxu0  ;;  %v1704_v49 = vpop.f32.mrb[4].mxu1 }
 0x283   :  { %v1683_v51 = vpop.f32.mrb[5].mxu0  ;;  %v1705_v52 = vpop.f32.mrb[5].mxu1 }
 0x284   :  { %v1684_v54 = vadd.f32 %v1683_v51, %v1682_v48  ;;  %v1706_v55 = vadd.f32 %v1705_v52, %v1704_v49  ;;  %v1685_v56 = vpop.f32.mrb[6].mxu0  ;;  %v1707_v57 = vpop.f32.mrb[6].mxu1 }
 0x285   :  { %v1686_v58 = vpop.f32.mrb[7].mxu0  ;;  %v1708_v59 = vpop.f32.mrb[7].mxu1 }
 0x286   :  { %v1003_v60 = vadd.f32 %v1684_v54, %v1597_v50  ;;  %v1687_v61 = vadd.f32 %v1686_v58, %v1685_v56  ;;  %v1709_v62 = vadd.f32 %v1708_v59, %v1707_v57 }
 0x288   :  { %v1044_v0 = vadd.f32 %v1706_v55, %v1003_v60  ;;  %v1006_v1 = vadd.f32 %v1687_v61, %v1597_v50 }
 0x28a   :  { %v1047_v2 = vadd.f32 %v1709_v62, %v1006_v1  ;;  %v1050_v3 = vmax.f32 %v1044_v0, 0.0 }
 0x28c   :  { %v1051_v4 = vmax.f32 %v1047_v2, 0.0 }
 0x28e   :  { %v1052_v5 = vpack.c.bf16 %v1051_v4, %v1050_v3 }
 0x290   :  { %1763 = vmatmul.mubr.bf16.vlgmr.msra.gmra.mrb[8].mxu0 %v1052_v5 }
 0x291   :  { %1802 = vmatprep.mubr.msk.bf16.mxu0 %vm2226_vm0, %v2225_v63  ;;  %1787 = vmatpush3.bf16.msra.mxu0 %v1987_v8 }
 0x292   :  { %1788 = vmatprep.subr.bf16.mxu0 %v2225_v63 }
 0x295   :  { %1789 = vmatpush3.bf16.msra.mxu0 %v1988_v9 }
 0x296   :  { %1790 = vmatprep.subr.bf16.mxu0 %v2225_v63 }
 0x299   :  { %1791 = vmatpush3.bf16.msra.mxu0 %v1989_v10 }
 0x29a   :  { %1792 = vmatprep.subr.bf16.mxu0 %v2225_v63 }
 0x29d   :  { %1793 = vmatpush3.bf16.msra.mxu0 %v1990_v11 }
 0x29e   :  { %1794 = vmatprep.subr.bf16.mxu0 %v2225_v63 }
 0x2a1   :  { %1795 = vmatpush3.bf16.msra.mxu0 %v1991_v12 }
 0x2a2   :  { %1796 = vmatprep.subr.bf16.mxu0 %v2225_v63 }
 0x2a5   :  { %1797 = vmatpush3.bf16.msra.mxu0 %v1992_v13 }
 0x2a6   :  { %1798 = vmatprep.subr.bf16.mxu0 %v2225_v63 }
 0x2a9   :  { %1799 = vmatpush3.bf16.msra.mxu0 %v1993_v22 }
 0x2aa   :  { %1800 = vmatprep.subr.bf16.mxu0 %v2225_v63 }
 0x2ad   :  { %1801 = vmatpush3.bf16.msra.mxu0 %v1994_v47 }
 0x363   :  { %v1158_v15 = vpop.f32.mrb[8].mxu0 }
 0x364   :  { %v1159_v16 = vadd.f32 %v1630_v14, %v1158_v15  ;;  %v1764_v17 = vpop.f32.mrb[9].mxu0 }
 0x365   :  { %v1161_v18 = vpop.f32.mrb[10].mxu0 }
 0x366   :  { %v1162_v19 = vadd.f32 %v1630_v14, %v1161_v18  ;;  %v1765_v42 = vpop.f32.mrb[11].mxu0  ;;  %v1165_v20 = vmax.f32 %v1159_v16, 0.0 }
 0x368   :  { %v1166_v53 = vmax.f32 %v1162_v19, 0.0 }
 0x36a   :  { %v1167_v21 = vpack.c.bf16 %v1166_v53, %v1165_v20 }
 0x36c   :  { %1783 = vmatmul.mubr.bf16.vlgmr.msra.gmra.mrb[8].mxu1 %v1167_v21 }
 0x36d   :  { %1822 = vmatprep.mubr.msk.bf16.mxu1 %vm2226_vm0, %v2225_v63  ;;  %1807 = vmatpush3.bf16.msra.mxu1 %v1995_v23 }
 0x36e   :  { %1808 = vmatprep.subr.bf16.mxu1 %v2225_v63 }
 0x371   :  { %1809 = vmatpush3.bf16.msra.mxu1 %v1996_v24 }
 0x372   :  { %1810 = vmatprep.subr.bf16.mxu1 %v2225_v63 }
 0x375   :  { %1811 = vmatpush3.bf16.msra.mxu1 %v1997_v25 }
 0x376   :  { %1812 = vmatprep.subr.bf16.mxu1 %v2225_v63 }
 0x379   :  { %1813 = vmatpush3.bf16.msra.mxu1 %v1998_v26 }
 0x37a   :  { %1814 = vmatprep.subr.bf16.mxu1 %v2225_v63 }
 0x37d   :  { %1815 = vmatpush3.bf16.msra.mxu1 %v1999_v27 }
 0x37e   :  { %1816 = vmatprep.subr.bf16.mxu1 %v2225_v63 }
 0x381   :  { %1817 = vmatpush3.bf16.msra.mxu1 %v2000_v28 }
 0x382   :  { %1818 = vmatprep.subr.bf16.mxu1 %v2225_v63 }
 0x385   :  { %1819 = vmatpush3.bf16.msra.mxu1 %v2001_v39 }
 0x386   :  { %1820 = vmatprep.subr.bf16.mxu1 %v2225_v63  ;;  %v1657_v63 = vld [vmem:[%s2552_s14] ss:$0 sm:$0xff] }
 0x389   :  { %1821 = vmatpush3.bf16.msra.mxu1 %v2002_v40 }
 0x43f   :  { %v1273_v30 = vpop.f32.mrb[8].mxu1 }
 0x440   :  { %v1274_v31 = vadd.f32 %v1639_v29, %v1273_v30  ;;  %v1784_v32 = vpop.f32.mrb[9].mxu1 }
 0x441   :  { %v1276_v33 = vpop.f32.mrb[10].mxu1 }
 0x442   :  { %v1277_v34 = vadd.f32 %v1639_v29, %v1276_v33  ;;  %v1785_v35 = vpop.f32.mrb[11].mxu1  ;;  %v1280_v36 = vmax.f32 %v1274_v31, 0.0 }
 0x444   :  { %v1281_v37 = vmax.f32 %v1277_v34, 0.0 }
 0x446   :  { %v1282_v38 = vpack.c.bf16 %v1281_v37, %v1280_v36 }
 0x448   :  { %1803 = vmatmul.mubr.bf16.vlgmr.msra.gmra.mrb[12].mxu0 %v1282_v38 }
 0x51b   :  { %v1388_v43 = vpop.f32.mrb[12].mxu0 }
 0x51c   :  { %v1389_v44 = vadd.f32 %v1648_v41, %v1388_v43  ;;  %v1804_v45 = vpop.f32.mrb[13].mxu0 }
 0x51d   :  { %v1391_v46 = vpop.f32.mrb[14].mxu0 }
 0x51e   :  { %v1392_v48 = vadd.f32 %v1648_v41, %v1391_v46  ;;  %v1805_v49 = vpop.f32.mrb[15].mxu0  ;;  %v1395_v50 = vmax.f32 %v1389_v44, 0.0 }
 0x520   :  { %v1396_v51 = vmax.f32 %v1392_v48, 0.0 }
 0x522   :  { %v1397_v52 = vpack.c.bf16 %v1396_v51, %v1395_v50 }
 0x524   :  { %1823 = vmatmul.mubr.bf16.vlgmr.msra.gmra.mrb[12].mxu1 %v1397_v52 }
 0x5f7   :  { %v1503_v54 = vpop.f32.mrb[12].mxu1 }
 0x5f8   :  { %v1504_v55 = vadd.f32 %v1657_v63, %v1503_v54  ;;  %v1824_v56 = vpop.f32.mrb[13].mxu1 }
 0x5f9   :  { %v1506_v57 = vpop.f32.mrb[14].mxu1 }
 0x5fa   :  { %1510 = vst [vmem:[#allocation16] sm:$0xff] %v1504_v55  ;;  %v1507_v58 = vadd.f32 %v1657_v63, %v1506_v57  ;;  %v1825_v59 = vpop.f32.mrb[15].mxu1 }
 0x5fc   :  { %1511 = vst [vmem:[#allocation16 + $0x8] sm:$0xff] %v1507_v58 }
 0x5fd   :  { %2190 = shalt.err (!%p2187_p12)
}
 0x5fe   :  { %s2191_s16 = scalar_lea.hbm %s2553_s15, 256 }
 0x5ff   :  { %p2192_p13 = scmp.ne.s32.totalorder %s2553_s15, %s2191_s16  ;;  %p2195_p0 = scmp.lt.u32.totalorder %s2191_s16, %s2553_s15 }
 0x601   :  { %p2197_p1 = pnand %p2195_p0, %p2192_p13 }
 0x603   :  { %2200 = shalt.err (!%p2197_p1)
}
 0x604   :  { %s2228_s9 = smov 128   ;;  %s2229_s30 = smov 8  }
 0x605   :  { %1523 = dma.vmem_to_hbm [thread:$0]  %s1518_s7, 256, %s2553_s15, [#allocation4], %s2228_s9, %s2228_s9, %s2229_s30  }
 0x606   :  { %2211 = dma.done.wait [#allocation4], 256  }
 0x607   :  { %2212 = vsyncadd [#allocation4], 4294967040 }
 0x608   :  { %1527 = vsyncpa [#allocation3], 1 }
 0x609   :  { %1528 = vsyncpa [#allocation6], 1 }
 0x60a   :  { %1529 = vsyncpa [#allocation9], 1 }
 0x60b   :  { %1530 = vsyncpa [#allocation12], 1 }
 0x60c   :  { %1531 = vsyncpa [#allocation15], 1 }
 0x60d   :  { %1532 = vsyncpa [#allocation4], 1 }

</bundles_post_ra>
